<compile_context>
chip_gen: v7x
topology: tpu7x:2x2x1
jax: 0.10.0
libtpu: 0.0.40
codegen_flags: <defaults>
</compile_context>

<pallas_src>
from functools import partial

import jax
import jax.numpy as jnp
from jax.experimental import pallas as pl
from jax.experimental.pallas import tpu as pltpu


def _glu_kernel(a_ref, b_ref, o_ref):
    a = a_ref[...].astype(jnp.float32)
    b = b_ref[...].astype(jnp.float32)
    # sigmoid(b) = 0.5 * tanh(0.5 * b) + 0.5  -> a single EUP op per element.
    sig = 0.5 * jnp.tanh(0.5 * b) + 0.5
    o_ref[...] = (a * sig).astype(o_ref.dtype)


_TARGET_BLOCK_BYTES = 2 * 1024 * 1024  # ~2 MiB/block; 6 blocks < v5e default scoped VMEM


def _pick_lane_width(L):
    """Largest multiple of 128 dividing L, capped at 4096 lanes."""
    k_max = min(L // 128, 32)
    for k in range(k_max, 0, -1):
        c = 128 * k
        if L % c == 0:
            return c
    return 128


def _pick_row_block(R, C, outer, itemsize):
    """Choose (bo, bR) so one (bo, bR, C) block is ~_TARGET_BLOCK_BYTES."""
    target_elems = max(C, _TARGET_BLOCK_BYTES // itemsize)
    if R * C >= target_elems:
        bo = 1
        bR = max(8, (target_elems // C) // 8 * 8)
        bR = min(bR, R)
        # Prefer a multiple-of-8 divisor of R (avoids edge blocks) but never
        # shrink the block by more than 2x; otherwise keep cdiv edge padding.
        cand = bR
        while cand >= 8 and R % cand != 0:
            cand -= 8
        if cand >= max(8, bR // 2):
            bR = cand
    else:
        bR = R
        bo0 = max(1, min(outer, target_elems // (R * C)))
        bo = bo0
        while bo > 1 and outer % bo != 0:
            bo -= 1
        if bo < max(1, bo0 // 2):
            bo = bo0  # accept edge padding instead of tiny blocks
    return bo, bR


@partial(jax.jit, static_argnames=("dim",))
def qglu_forward(x, dim=1):
    """Equivalent of QGLU.forward: a, b = chunk(x, 2, dim); out = a * sigmoid(b)."""
    dim = dim % x.ndim
    n = x.shape[dim]
    if n % 2 != 0:
        raise ValueError("GLU dim must have even size")
    half = n // 2

    outer = 1
    for s in x.shape[:dim]:
        outer *= s
    inner = 1
    for s in x.shape[dim + 1:]:
        inner *= s
    L = half * inner                      # contiguous length of each half-chunk
    itemsize = jnp.dtype(x.dtype).itemsize
    out_shape = x.shape[:dim] + (half,) + x.shape[dim + 1:]

    # Free (contiguous) reshape: the 2-way split becomes its own axis.
    x3 = x.reshape(outer, 2, L)

    # Lane-dense layout: pad the per-half length to a multiple of 1024 only
    # when needed, so we can always tile it as (R, C) with C % 128 == 0.
    if L % 128 == 0:
        Lp = L
    else:
        Lp = ((L + 1023) // 1024) * 1024
        x3 = jnp.pad(x3, ((0, 0), (0, 0), (0, Lp - L)))

    C = _pick_lane_width(Lp)
    R = Lp // C
    x4 = x3.reshape(outer, 2, R, C)

    bo, bR = _pick_row_block(R, C, outer, itemsize)
    grid = (pl.cdiv(outer, bo), pl.cdiv(R, bR))

    # The split lives entirely in the index_maps: same array fed twice,
    # a-spec reads index 0 of the size-2 axis, b-spec reads index 1.
    a_spec = pl.BlockSpec((bo, pl.Squeezed(), bR, C), lambda o, r: (o, 0, r, 0))
    b_spec = pl.BlockSpec((bo, pl.Squeezed(), bR, C), lambda o, r: (o, 1, r, 0))
    o_spec = pl.BlockSpec((bo, bR, C), lambda o, r: (o, r, 0))

    out = pl.pallas_call(
        _glu_kernel,
        out_shape=jax.ShapeDtypeStruct((outer, R, C), x.dtype),
        grid_spec=pltpu.PrefetchScalarGridSpec(
            num_scalar_prefetch=0,
            grid=grid,
            in_specs=[a_spec, b_spec],
            out_specs=o_spec,
        ),
        compiler_params=pltpu.CompilerParams(
            dimension_semantics=("parallel", "parallel"),
        ),
    )(x4, x4)

    out = out.reshape(outer, Lp)
    if Lp != L:
        out = out[:, :L]
    return out.reshape(out_shape)


if __name__ == "__main__":
    key = jax.random.PRNGKey(0)
    k1, _ = jax.random.split(key)
    # NCHW input, channel dim is even so it can be chunked in two.
    x = jax.random.normal(k1, (2, 4, 16, 16), dtype=jnp.float32)

    out = qglu_forward(x, dim=1)
    out = jax.block_until_ready(out)

    # reference check (plain JAX)
    a, b = jnp.split(x, 2, axis=1)
    ref = a * jax.nn.sigmoid(b)
    assert out.shape == (2, 2, 16, 16), out.shape
    assert jnp.allclose(out, ref, atol=1e-5, rtol=1e-5), float(
        jnp.max(jnp.abs(out - ref))
    )

    print("KERNEL_OK")
</pallas_src>

<mosaic_0001>
module attributes {stable_mosaic.version = 11 : i64} {
  func.func @_glu_kernel(%arg0: i32, %arg1: i32, %arg2: memref<2x1x1x512xf32, #tpu.memory_space<vmem>>, %arg3: memref<2x1x1x512xf32, #tpu.memory_space<vmem>>, %arg4: memref<2x1x512xf32, #tpu.memory_space<vmem>>) attributes {dimension_semantics = [#tpu.dimension_semantics<parallel>, #tpu.dimension_semantics<parallel>], iteration_bounds = array<i64: 1, 1>, scalar_prefetch = 0 : i64, scratch_operands = 0 : i64, tpu.core_type = #tpu.core_type<tc>, window_params = [{transform_indices = @transform_0, window_bounds = array<i64: 2, 1, 1, 512>}, {transform_indices = @transform_1, window_bounds = array<i64: 2, 1, 1, 512>}, {transform_indices = @transform_2, window_bounds = array<i64: 2, 1, 512>}]} {
    %c0 = arith.constant 0 : index
    %c0_0 = arith.constant 0 : index
    %c0_1 = arith.constant 0 : index
    %c0_2 = arith.constant 0 : index
    %0 = vector.load %arg2[%c0, %c0_0, %c0_1, %c0_2] : memref<2x1x1x512xf32, #tpu.memory_space<vmem>>, vector<2x1x1x512xf32>
    %1 = vector.shape_cast %0 : vector<2x1x1x512xf32> to vector<2x1x512xf32>
    %c0_3 = arith.constant 0 : index
    %c0_4 = arith.constant 0 : index
    %c0_5 = arith.constant 0 : index
    %c0_6 = arith.constant 0 : index
    %2 = vector.load %arg3[%c0_3, %c0_4, %c0_5, %c0_6] : memref<2x1x1x512xf32, #tpu.memory_space<vmem>>, vector<2x1x1x512xf32>
    %3 = vector.shape_cast %2 : vector<2x1x1x512xf32> to vector<2x1x512xf32>
    %cst = arith.constant 5.000000e-01 : f32
    %4 = vector.broadcast %cst : f32 to vector<2x1x512xf32>
    %5 = arith.mulf %4, %3 : vector<2x1x512xf32>
    %6 = math.tanh %5 : vector<2x1x512xf32>
    %cst_7 = arith.constant 5.000000e-01 : f32
    %7 = vector.broadcast %cst_7 : f32 to vector<2x1x512xf32>
    %8 = arith.mulf %7, %6 : vector<2x1x512xf32>
    %cst_8 = arith.constant 5.000000e-01 : f32
    %9 = vector.broadcast %cst_8 : f32 to vector<2x1x512xf32>
    %10 = arith.addf %8, %9 : vector<2x1x512xf32>
    %11 = arith.mulf %1, %10 : vector<2x1x512xf32>
    %c0_9 = arith.constant 0 : index
    %c0_10 = arith.constant 0 : index
    %c0_11 = arith.constant 0 : index
    %12 = vector.load %arg4[%c0_9, %c0_10, %c0_11] : memref<2x1x512xf32, #tpu.memory_space<vmem>>, vector<2x1x512xf32>
    tpu.vector_store %arg4[%c0_9, %c0_10, %c0_11], %11 {strides = array<i32>} : memref<2x1x512xf32, #tpu.memory_space<vmem>>, vector<2x1x512xf32>,
    return
  }
  func.func @transform_0(%arg0: i32, %arg1: i32) -> (i32, i32, i32, i32) {
    %c0_i32 = arith.constant 0 : i32
    %c0_i32_0 = arith.constant 0 : i32
    %c0_i32_1 = arith.constant 0 : i32
    return %arg0, %c0_i32, %arg1, %c0_i32_0 : i32, i32, i32, i32
  }
  func.func @transform_1(%arg0: i32, %arg1: i32) -> (i32, i32, i32, i32) {
    %c1_i32 = arith.constant 1 : i32
    %c0_i32 = arith.constant 0 : i32
    %c0_i32_0 = arith.constant 0 : i32
    return %arg0, %c1_i32, %arg1, %c0_i32 : i32, i32, i32, i32
  }
  func.func @transform_2(%arg0: i32, %arg1: i32) -> (i32, i32, i32) {
    %c0_i32 = arith.constant 0 : i32
    %c0_i32_0 = arith.constant 0 : i32
    return %arg0, %arg1, %c0_i32 : i32, i32, i32
  }
}

</mosaic_0001>

<bundles_post_ra>
// kernel: qglu_forward.1
= control target key start
LH: loop header
LB: loop body
LE: loop exit
PB: predicated region body
PF: predicated region fallthrough
CT: control target
= control target key end

     0   :  { %v116_v9 = vlaneseq  ;;  %s173_s0 = inlined_call_operand.vmem [shape: f32[2,2,1,512], index: 0, kind: input, shape index: {}, may-alias: {0,1}]   ;;  %s174_s1 = inlined_call_operand.vmem [shape: f32[2,2,1,512], index: 1, kind: input, shape index: {}, may-alias: {0,1}]   ;;  %s175_s2 = inlined_call_operand.vmem [shape: f32[2,1,512], index: 2, kind: output, shape index: {}]  }
   0x1   :  { %v134_v0 = vld [vmem:[%s174_s1 + $0x4] sm:$0xf]  ;;  %v135_v1 = vld [vmem:[%s174_s1 + $0xc] sm:$0xf]  ;;  %v24_v2 = vld [vmem:[%s173_s0] sm:$0xf] }
   0x2   :  { %71 = vst [vmem:[#allocation3] sm:$0xf] %v134_v0  ;;  %73 = vst [vmem:[#allocation3 + $0x4] sm:$0xf] %v135_v1  ;;  %v26_v3 = vld [vmem:[%s173_s0 + $0x8] sm:$0xf] }
   0x3   :  { %25 = vst [vmem:[#allocation2] sm:$0xf] %v24_v2  ;;  %27 = vst [vmem:[#allocation2 + $0x4] sm:$0xf] %v26_v3  ;;  %vm118_vm0 = vcmp.lt.s32.totalorder %v116_v9, 512 }
   0x9   :  { %v104_v4 = vld [vmem:[#allocation3] sm:$0xf]  ;;  %v105_v5 = vld [vmem:[#allocation3 + $0x4] sm:$0xf] }
   0xa   :  { %v106_v6 = vmul.f32 0.5, %v104_v4  ;;  %v107_v7 = vmul.f32 0.5, %v105_v5  ;;  %v102_v12 = vld [vmem:[#allocation2] sm:$0xf]  ;;  %v103_v15 = vld [vmem:[#allocation2 + $0x4] sm:$0xf] }
   0xc   :  { %136 = vtanh.f32 %v106_v6 }
   0xd   :  { %138 = vtanh.f32 %v107_v7 }
  0x16   :  { %v137_v8 = vpop.eup %136 }
  0x17   :  { %v139_v10 = vpop.eup %138  ;;  %v110_v11 = vmul.f32 0.5, %v137_v8 }
  0x18   :  { %v111_v13 = vmul.f32 0.5, %v139_v10 }
  0x19   :  { %v112_v14 = vadd.f32 0.5, %v110_v11 }
  0x1a   :  { %v113_v16 = vadd.f32 0.5, %v111_v13 }
  0x1b   :  { %v114_v17 = vmul.f32 %v112_v14, %v102_v12 }
  0x1c   :  { %v115_v18 = vmul.f32 %v113_v16, %v103_v15 }
  0x1d   :  { %120 = vst.msk [vmem:[%s175_s2] sm:$0xf] %vm118_vm0, %v114_v17 }
  0x1e   :  { %121 = vst.msk [vmem:[%s175_s2 + $0x4] sm:$0xf] %vm118_vm0, %v115_v18 }

</bundles_post_ra>
